<compile_context>
chip_gen: v6e
topology: v6e:2x2x1
jax: 0.10.0
libtpu: 0.0.40
codegen_flags: <defaults>
</compile_context>

<pallas_src>
import jax
import jax.numpy as jnp
from jax.experimental import pallas as pl
from jax.experimental.pallas import tpu as pltpu

_LANES = 128
_TARGET_TILE_BYTES = 2 * 1024 * 1024      # ~2 MiB per operand per pipeline buffer
_MIN_KERNEL_ELEMS = 256 * 1024            # below this, XLA's fused elementwise wins
_VMEM_LIMIT_BYTES = 32 * 1024 * 1024      # > v5e's 16 MiB default, == v6e/v7x default


def _sublane_pack(*dtypes):
    """Row-alignment granularity: 8 for 4-byte, 16 for 2-byte, 32 for 1-byte dtypes."""
    min_item = min(jnp.dtype(d).itemsize for d in dtypes)
    min_item = max(1, min(4, int(min_item)))
    return 32 // min_item


def _round_up(v, m):
    return (v + m - 1) // m * m


def _affine_add_kernel(sc_ref, x_ref, o_ref, out_ref):
    # sc_ref: (2,) f32 in SMEM -> [scale, offset];  out = x*scale + offset + other
    w = sc_ref[0]
    b = sc_ref[1]
    out_ref[...] = (x_ref[...].astype(jnp.float32) * w + b
                    + o_ref[...].astype(jnp.float32)).astype(out_ref.dtype)


def _affine_kernel(sc_ref, x_ref, out_ref):
    # out = x*scale + offset   (used when the other operand folded into the scalars)
    w = sc_ref[0]
    b = sc_ref[1]
    out_ref[...] = (x_ref[...].astype(jnp.float32) * w + b).astype(out_ref.dtype)


def _launch_rowblocks(kernel, scalars, streams, rows, out_dtype, flops_per_elem):
    """Run `kernel` over lane-dense (rows, 128) slabs with auto-pipelined row tiles."""
    sub = _sublane_pack(out_dtype, *(s.dtype for s in streams))
    max_item = max(jnp.dtype(out_dtype).itemsize,
                   *(jnp.dtype(s.dtype).itemsize for s in streams))

    # ~2 MiB per operand buffer, rounded down to the dtype's sublane packing.
    cap = max(sub, (_TARGET_TILE_BYTES // (_LANES * int(max_item))) // sub * sub)
    # Keep >= 4 grid steps when the array allows it (v7x: 2 TCs x steady-state pipelining).
    tile_rows = min(cap, _round_up(pl.cdiv(rows, 4), sub))
    tile_rows = max(sub, min(tile_rows, _round_up(rows, sub)))
    grid = (pl.cdiv(rows, tile_rows),)

    n_elems = rows * _LANES
    bytes_accessed = n_elems * int(jnp.dtype(out_dtype).itemsize)
    for s in streams:
        bytes_accessed += n_elems * int(jnp.dtype(s.dtype).itemsize)

    stream_spec = pl.BlockSpec((tile_rows, _LANES), lambda i: (i, 0))
    return pl.pallas_call(
        kernel,
        out_shape=jax.ShapeDtypeStruct((rows, _LANES), out_dtype),
        grid=grid,
        in_specs=[pl.BlockSpec(memory_space=pltpu.MemorySpace.SMEM)]
                 + [stream_spec] * len(streams),
        out_specs=stream_spec,
        compiler_params=pltpu.CompilerParams(
            dimension_semantics=("parallel",),
            vmem_limit_bytes=_VMEM_LIMIT_BYTES,
            # Fuse cheap reshape/slice producers into the pallas_call inputs instead of
            # materializing them in HBM (this op is 100% HBM-bandwidth bound).
            allow_input_fusion=[False] + [True] * len(streams),
        ),
        cost_estimate=pl.CostEstimate(
            flops=flops_per_elem * n_elems,
            transcendentals=0,
            bytes_accessed=bytes_accessed,
        ),
    )(scalars, *streams)


def linear_add(x, other, weight, bias, *, min_kernel_elems=_MIN_KERNEL_ELEMS):
    """torch.nn.Linear(1, 1)(x) + other, with PyTorch broadcasting/dtype semantics."""
    out_shape = jnp.broadcast_shapes(x.shape, other.shape)
    out_dtype = jnp.result_type(x.dtype, weight.dtype, other.dtype)

    w = weight.reshape(()).astype(jnp.float32)
    b = bias.reshape(()).astype(jnp.float32)

    n = 1
    for d in out_shape:
        n *= int(d)

    def xla_path():
        return (x.astype(jnp.float32) * w + b
                + other.astype(jnp.float32)).astype(out_dtype)

    x_size = x.size
    o_size = other.size

    # Small arrays, or genuinely mixed broadcasts (neither same-shape nor size-1):
    # XLA's fused elementwise already hits the HBM roofline and avoids materializing
    # broadcast_to just to feed the kernel.
    kernel_ok = (n >= min_kernel_elems
                 and (x.shape == out_shape or x_size == 1)
                 and (other.shape == out_shape or o_size == 1)
                 and not (x_size == 1 and o_size == 1))
    if not kernel_ok:
        return xla_path()

    if o_size == 1:
        # out = x*w + (b + other)  -- fold the broadcasted operand into the SMEM offset.
        streams = [x.reshape(-1)]
        scalars = jnp.stack([w, b + other.reshape(()).astype(jnp.float32)])
        kernel, flops_per_elem = _affine_kernel, 2
    elif x_size == 1:
        # out = other*1 + (x*w + b)
        streams = [other.reshape(-1)]
        scalars = jnp.stack([jnp.asarray(1.0, jnp.float32),
                             x.reshape(()).astype(jnp.float32) * w + b])
        kernel, flops_per_elem = _affine_kernel, 2
    else:
        streams = [x.reshape(-1), other.reshape(-1)]
        scalars = jnp.stack([w, b])
        kernel, flops_per_elem = _affine_add_kernel, 3

    # Lane-dense main slab: largest 128-multiple prefix (contiguous reshape, no pad).
    rows = n // _LANES
    n_main = rows * _LANES
    if rows == 0:
        return xla_path()

    main_streams = [s[:n_main].reshape(rows, _LANES) for s in streams]
    out_main = _launch_rowblocks(kernel, scalars, main_streams, rows,
                                 out_dtype, flops_per_elem)
    out_flat = out_main.reshape(-1)

    if n_main < n:
        # < 128-element ragged tail: negligible, handled by XLA.
        tails = [s[n_main:].astype(jnp.float32) for s in streams]
        tail = tails[0] * scalars[0] + scalars[1]
        if kernel is _affine_add_kernel:
            tail = tail + tails[1]
        out_flat = jnp.concatenate([out_flat, tail.astype(out_dtype)])

    return out_flat.reshape(out_shape)


if __name__ == "__main__":
    key = jax.random.PRNGKey(0)
    k_x, k_o, k_w, k_b = jax.random.split(key, 4)

    # Deterministic synthetic Linear(1, 1) parameters.
    weight = jax.random.normal(k_w, (1, 1), dtype=jnp.float32)   # W: (out=1, in=1)
    bias = jax.random.normal(k_b, (1,), dtype=jnp.float32)       # b: (1,)

    def torch_ref(xx, oo):
        return xx @ weight.T + bias + oo

    # Case 1: small, lane-unaligned (n = 2000) -> kernel on aligned prefix + XLA tail.
    x1 = jax.random.normal(k_x, (2, 1000, 1), dtype=jnp.float32)
    o1 = jax.random.normal(k_o, (2, 1000, 1), dtype=jnp.float32)
    out1 = linear_add(x1, o1, weight, bias, min_kernel_elems=0)  # force the Pallas path
    jax.block_until_ready(out1)
    ref1 = torch_ref(x1, o1)
    assert out1.shape == ref1.shape and out1.dtype == ref1.dtype
    assert jnp.allclose(out1, ref1, atol=1e-5), "mismatch vs reference (case 1)"

    # Case 2: lane-aligned, multi-step grid (n = 32768 -> rows=256, 4 grid steps).
    x2 = jax.random.normal(k_x, (4, 8192, 1), dtype=jnp.float32)
    o2 = jax.random.normal(k_o, (4, 8192, 1), dtype=jnp.float32)
    out2 = linear_add(x2, o2, weight, bias, min_kernel_elems=0)
    jax.block_until_ready(out2)
    assert jnp.allclose(out2, torch_ref(x2, o2), atol=1e-5), "mismatch (case 2)"

    # Case 3: broadcasted `other` of shape (1,) -> folded into SMEM scalars, single stream.
    o3 = jax.random.normal(k_o, (1,), dtype=jnp.float32)
    out3 = linear_add(x2, o3, weight, bias, min_kernel_elems=0)
    jax.block_until_ready(out3)
    assert jnp.allclose(out3, torch_ref(x2, o3), atol=1e-5), "mismatch (case 3)"

    # Case 4: tiny input below the bypass threshold -> fused XLA fallback.
    x4 = jax.random.normal(k_x, (2, 8, 1), dtype=jnp.float32)
    o4 = jax.random.normal(k_o, (2, 8, 1), dtype=jnp.float32)
    out4 = linear_add(x4, o4, weight, bias)
    jax.block_until_ready(out4)
    assert jnp.allclose(out4, torch_ref(x4, o4), atol=1e-5), "mismatch (case 4)"

    print("KERNEL_OK")
</pallas_src>

<mosaic_0001>
module attributes {stable_mosaic.version = 11 : i64} {
  func.func @_affine_add_kernel(%arg0: i32, %arg1: memref<2xf32, #tpu.memory_space<smem>>, %arg2: memref<8x128xf32, #tpu.memory_space<vmem>>, %arg3: memref<8x128xf32, #tpu.memory_space<vmem>>, %arg4: memref<8x128xf32, #tpu.memory_space<vmem>>) attributes {dimension_semantics = [#tpu.dimension_semantics<parallel>], iteration_bounds = array<i64: 2>, scalar_prefetch = 0 : i64, scratch_operands = 0 : i64, tpu.core_type = #tpu.core_type<tc>, window_params = [{transform_indices = @transform_0, window_bounds = array<i64: 2>}, {transform_indices = @transform_1, window_bounds = array<i64: 8, 128>}, {transform_indices = @transform_2, window_bounds = array<i64: 8, 128>}, {transform_indices = @transform_3, window_bounds = array<i64: 8, 128>}]} {
    %c0 = arith.constant 0 : index
    %0 = memref.load %arg1[%c0] : memref<2xf32, #tpu.memory_space<smem>>
    %c1 = arith.constant 1 : index
    %1 = memref.load %arg1[%c1] : memref<2xf32, #tpu.memory_space<smem>>
    %c0_0 = arith.constant 0 : index
    %c0_1 = arith.constant 0 : index
    %2 = vector.load %arg2[%c0_0, %c0_1] : memref<8x128xf32, #tpu.memory_space<vmem>>, vector<8x128xf32>
    %3 = vector.broadcast %0 : f32 to vector<8x128xf32>
    %4 = arith.mulf %2, %3 : vector<8x128xf32>
    %5 = vector.broadcast %1 : f32 to vector<8x128xf32>
    %6 = arith.addf %4, %5 : vector<8x128xf32>
    %c0_2 = arith.constant 0 : index
    %c0_3 = arith.constant 0 : index
    %7 = vector.load %arg3[%c0_2, %c0_3] : memref<8x128xf32, #tpu.memory_space<vmem>>, vector<8x128xf32>
    %8 = arith.addf %6, %7 : vector<8x128xf32>
    %c0_4 = arith.constant 0 : index
    %c0_5 = arith.constant 0 : index
    %9 = vector.load %arg4[%c0_4, %c0_5] : memref<8x128xf32, #tpu.memory_space<vmem>>, vector<8x128xf32>
    tpu.vector_store %arg4[%c0_4, %c0_5], %8 {strides = array<i32>} : memref<8x128xf32, #tpu.memory_space<vmem>>, vector<8x128xf32>,
    return
  }
  func.func @transform_0(%arg0: i32) -> i32 {
    %c0_i32 = arith.constant 0 : i32
    %c0_i32_0 = arith.constant 0 : i32
    return %c0_i32 : i32
  }
  func.func @transform_1(%arg0: i32) -> (i32, i32) {
    %c0_i32 = arith.constant 0 : i32
    %c0_i32_0 = arith.constant 0 : i32
    return %arg0, %c0_i32 : i32, i32
  }
  func.func @transform_2(%arg0: i32) -> (i32, i32) {
    %c0_i32 = arith.constant 0 : i32
    %c0_i32_0 = arith.constant 0 : i32
    return %arg0, %c0_i32 : i32, i32
  }
  func.func @transform_3(%arg0: i32) -> (i32, i32) {
    %c0_i32 = arith.constant 0 : i32
    %c0_i32_0 = arith.constant 0 : i32
    return %arg0, %c0_i32 : i32, i32
  }
}

</mosaic_0001>

<bundles_post_ra>
// kernel: tpu_custom_call.1
= control target key start
LH: loop header
LB: loop body
LE: loop exit
PB: predicated region body
PF: predicated region fallthrough
CT: control target
= control target key end

     0   :  { %8 = vsyncpa [#allocation5], 0  ;;  %s812_s0 = inlined_call_operand.hbm [shape: f32[2], index: 0, kind: input, shape index: {}]   ;;  %s813_s1 = inlined_call_operand.hbm [shape: f32[15,128], index: 1, kind: input, shape index: {}]   ;;  %s814_s2 = inlined_call_operand.hbm [shape: f32[15,128], index: 2, kind: input, shape index: {}]   ;;  %s815_s3 = inlined_call_operand.hbm [shape: f32[15,128], index: 3, kind: output, shape index: {}]  }
   0x1   :  { %9 = vsyncpa [#allocation3], 0 }
   0x2   :  { %11 = vsyncpa [#allocation3 + $0x1], 0 }
   0x3   :  { %12 = vsyncpa [#allocation8], 0 }
   0x4   :  { %14 = vsyncpa [#allocation8 + $0x1], 0 }
   0x5   :  { %15 = vsyncpa [#allocation4], 0 }
   0x6   :  { %17 = vsyncpa [#allocation4 + $0x1], 0  ;;  %s609_s12 = smov 0   ;;  %s611_s13 = smov 0  }
   0x7   :  { %s613_s14 = smov 0   ;;  %s615_s15 = smov 0  }
   0x8 LB: > { %s630_s16 = sadd.s32 4294967295, %s583_s15   ;;  %s364_s17 = sadd.s32 4294967294, %s583_s15   ;;  %s583_s15 = sphi %s615_s15, %s835_s15   ;;  %s579_s14 = sphi %s613_s14, %s834_s14   ;;  %s575_s13 = sphi %s611_s13, %s833_s13   ;;  %s571_s12 = sphi %s609_s12, %s832_s12  }
   0x9   : > { %s634_s18 = sadd.s32 1, %s583_s15   ;;  %s51_s19 = sadd.s32 1, %s579_s14 }
   0xa   : > { %s48_s20 = ssub.s32 %s583_s15, %s634_s18  ;;  %p58_p0 = scmp.ne.s32.totalorder %s579_s14, %s575_s13 }
   0xb   : > { %p49_p1 = scmp.eq.s32.totalorder %s48_s20, 0  ;;  %p64_p2 = scmp.ne.s32.totalorder %s575_s13, %s571_s12 }
   0xc   : > { %p816_p3 = scmp.eq.s32.totalorder %s630_s16, 0  ;;  %p114_p4 = scmp.eq.s32.totalorder %s630_s16, 1 }
   0xd   : > { %s646_s21 = scalar_select %p49_p1, %s579_s14, %s51_s19  }
   0xe   : > { %p650_p5 = por %p816_p3, %p64_p2  ;;  %p657_p6 = por %p114_p4, %p58_p0 }
   0xf   : > { %p120_p7 = scmp.eq.s32.totalorder %s364_s17, 1  ;;  %p365_p8 = scmp.ge.s32.totalorder %s583_s15, 1 }
  0x10   : > { %s820_s22 = scalar_select %p650_p5, 1, 0 }
  0x11   : > { %s821_s23 = scalar_select %p657_p6, 1, 0 }
  0x12   : > { %p127_p9 = scmp.lt.s32.totalorder %s583_s15, 3  ;;  %p663_p10 = por %p120_p7, %p64_p2 }
  0x13   : > { %p59_p13 = scmp.eq.s32.totalorder %s583_s15, 0  ;;  %p408_p1 = scmp.lt.s32.totalorder %s583_s15, 2 }
  0x14   : > { %s822_s24 = scalar_select %p663_p10, 1, 0 }
  0x15   : > { %p667_p11 = pnand %p365_p8, %p127_p9  ;;  %s677_s26 = sand.u32 1, %s579_s14  }
  0x16   : > { %p60_p2 = por %p59_p13, %p58_p0  ;;  %s368_s27 = sshll.u32 %s677_s26, 3 }
  0x17   : > { %s823_s25 = scalar_select %p667_p11, 1, 0 }
  0x18   : > { %p392_p4 = pneg %p667_p11  ;;  %s369_s28 = sshll.u32 %s583_s15, 7 }
  0x19   : > { %s691_s4 = scalar_lea.hbm %s813_s1, %s369_s28  ;;  %s585_s5 = smov [#allocation2]  }
  0x1a   : > { %p393_p7 = pnand %p392_p4, %p816_p3  ;;  %s153_s8 = scalar_lea.vmem [#allocation6], %s368_s27 }
  0x1b   : > { %s160_s9 = sshll.u32 %s153_s8, 4  ;;  %p698_p0 = pnand %p408_p1, %p60_p2  ;;  %s161_s9 = int_to_ptr.vmem [resolvable:$true] %s160_s9 }
  0x1c   : > { %395 = dma.hbm_to_smem (!%p393_p7), %s812_s0, 16, %s585_s5, [#allocation5]  }
  0x1d   : > { %s150_s11 = scalar_lea.sflag [#allocation3], %s677_s26  ;;  %s455_s17 = scalar_lea.hbm %s691_s4, 128 }
  0x1e   : > { %p456_p8 = scmp.ne.s32.totalorder %s691_s4, %s455_s17  ;;  %p457_p9 = pneg %p698_p0 }
  0x1f   : > { %s460_s29 = scalar_lea.hbm %s813_s1, 256  ;;  %p461_p1 = scmp.lt.s32.totalorder %s691_s4, %s813_s1 }
  0x20   : > { %p458_p13 = pnand %p457_p9, %p456_p8  ;;  %p462_p2 = scmp.lt.s32.totalorder %s460_s29, %s455_s17 }
  0x22   : > { %p459_p4 = pneg %p458_p13  ;;  %p463_p7 = por %p462_p2, %p461_p1 }
  0x24   : > { %p464_p12 = pnand %p463_p7, %p459_p4 }
  0x26   : > { %467 = shalt.err (!%p464_p12)
}
  0x27   : > { %s468_s6 = scalar_lea.vmem %s161_s9, 128  ;;  %s586_s7 = smov [#allocation6]  }
  0x28   : > { %p469_p3 = scmp.ne.s32.totalorder %s161_s9, %s468_s6  ;;  %s473_s8 = sshll.u32 %s586_s7, 4  ;;  %s474_s8 = int_to_ptr.vmem [resolvable:$false] %s473_s8 }
  0x29   : > { %s475_s19 = scalar_lea.vmem %s474_s8, 256  ;;  %p476_p13 = scmp.lt.s32.totalorder %s161_s9, %s474_s8 }
  0x2a   : > { %p471_p10 = pnand %p469_p3, %p457_p9  ;;  %p477_p6 = scmp.lt.s32.totalorder %s475_s19, %s468_s6 }
  0x2c   : > { %p472_p8 = pneg %p471_p10  ;;  %p478_p5 = por %p477_p6, %p476_p13 }
  0x2e   : > { %p479_p11 = pnand %p478_p5, %p472_p8 }
  0x30   : > { %482 = shalt.err (!%p479_p11)
}
  0x31   : > { %399 = dma.hbm_to_vmem [thread:$0]  (!%p698_p0), %s691_s4, 128, %s161_s9, %s150_s11  }
  0x32   : > { %s728_s29 = scalar_lea.hbm %s814_s2, %s369_s28  ;;  %s171_s30 = scalar_lea.vmem [#allocation7], %s368_s27 }
  0x33   : > { %s178_s5 = sshll.u32 %s171_s30, 4  ;;  %s168_s6 = scalar_lea.sflag [#allocation8], %s677_s26  ;;  %s179_s5 = int_to_ptr.vmem [resolvable:$true] %s178_s5 }
  0x34   : > { %s483_s7 = scalar_lea.hbm %s728_s29, 128  ;;  %s488_s11 = scalar_lea.hbm %s814_s2, 256 }
  0x35   : > { %p484_p3 = scmp.ne.s32.totalorder %s728_s29, %s483_s7  ;;  %p489_p10 = scmp.lt.s32.totalorder %s728_s29, %s814_s2 }
  0x36   : > { %p490_p11 = scmp.lt.s32.totalorder %s488_s11, %s483_s7 }
  0x37   : > { %p486_p5 = pnand %p484_p3, %p457_p9 }
  0x38   : > { %p491_p12 = por %p490_p11, %p489_p10 }
  0x39   : > { %p487_p6 = pneg %p486_p5 }
  0x3b   : > { %p492_p4 = pnand %p491_p12, %p487_p6 }
  0x3d   : > { %495 = shalt.err (!%p492_p4)
}
  0x3e   : > { %s496_s27 = scalar_lea.vmem %s179_s5, 128  ;;  %s587_s26 = smov [#allocation7]  }
  0x3f   : > { %p497_p1 = scmp.ne.s32.totalorder %s179_s5, %s496_s27  ;;  %s501_s19 = sshll.u32 %s587_s26, 4  ;;  %s502_s19 = int_to_ptr.vmem [resolvable:$false] %s501_s19 }
  0x40   : > { %s503_s17 = scalar_lea.vmem %s502_s19, 256  ;;  %p504_p8 = scmp.lt.s32.totalorder %s179_s5, %s502_s19 }
  0x41   : > { %p499_p2 = pnand %p497_p1, %p457_p9  ;;  %p505_p13 = scmp.lt.s32.totalorder %s503_s17, %s496_s27 }
  0x43   : > { %p500_p7 = pneg %p499_p2  ;;  %p506_p3 = por %p505_p13, %p504_p8 }
  0x45   : > { %p507_p5 = pnand %p506_p3, %p500_p7 }
  0x47   : > { %510 = shalt.err (!%p507_p5)
}
  0x48   : > { %402 = dma.hbm_to_vmem [thread:$0]  (!%p698_p0), %s728_s29, 128, %s179_s5, %s168_s6  }
  0x49   : > { %p825_p6 = scmp.ne.s32.totalorder %s823_s25, 0 }
  0x4a   : > { %p826_p10 = scmp.eq.s32.totalorder (!%p825_p6), %s630_s16, 0 }
  0x4b   : > { %187 = sbr.rel (%p825_p6) target bundleno = 115 (0x73), region = 32 }
  0x50   : > { %554 = dma.done.wait (%p826_p10), [#allocation5], 16   ;;  %p827_p9 = pmov %p826_p10 }
  0x51   : > { %s758_s20 = sand.u32 1, %s575_s13   ;;  %p828_p11 = scmp.ne.s32.totalorder %s820_s22, 0 }
  0x52   : > { %556 = vsyncadd (%p827_p9), [#allocation5], 4294967280  ;;  %s374_s30 = sshll.u32 %s758_s20, 3  ;;  %s194_s7 = scalar_lea.sflag [#allocation3], %s758_s20 }
  0x53   : > { %s197_s10 = scalar_lea.vmem [#allocation6], %s374_s30 }
  0x54   : > { %558 = dma.done.wait (%p828_p11), %s194_s7, 128  }
  0x55   : > { %560 = vsyncadd (%p828_p11), %s194_s7, 4294967168  ;;  %s203_s25 = scalar_lea.sflag [#allocation8], %s758_s20  ;;  %s206_s29 = scalar_lea.vmem [#allocation7], %s374_s30 }
  0x56   : > { %562 = dma.done.wait (%p828_p11), %s203_s25, 128  }
  0x57   : > { %564 = vsyncadd (%p828_p11), %s203_s25, 4294967168 }
  0x58   : > { %211 = sfence }
  0x59   : > { %s235_s5 = sld [smem:[#allocation2]]  ;;  %v237_v0 = vld [vmem:[%s197_s10] sm:$0xff]  ;;  %s234_s4 = scalar_lea.vmem [#allocation9], %s374_s30  ;;  %v242_v4 = vld [vmem:[%s206_s29] sm:$0xff] }
  0x5a   : > { %s377_s6 = sld [smem:[#allocation2 + $0x1]]  ;;  %s259_s9 = sshll.u32 %s234_s4, 4  ;;  %s772_s9 = int_to_ptr.vmem [resolvable:$true] %s259_s9 }
  0x5b   : > { %s379_s11 = sshll.u32 %s630_s16, 7  ;;  %s246_s27 = scalar_lea.sflag [#allocation4], %s758_s20 }
  0x5c   : > { %s257_s8 = scalar_lea.hbm %s815_s3, %s379_s11  ;;  %s511_s26 = scalar_lea.vmem %s772_s9, 128 }
  0x5d   : > { %p512_p0 = scmp.ne.s32.totalorder %s772_s9, %s511_s26  ;;  %p829_p12 = scmp.ne.s32.totalorder %s821_s23, 0 }
  0x5e   : > { %s588_s19 = smov [#allocation9]  }
  0x5f   : > { %v238_v1 = vstv %s235_s5  ;;  %p513_p4 = pnand %p512_p0, %p829_p12  ;;  %s515_s16 = sshll.u32 %s588_s19, 4  ;;  %s516_s16 = int_to_ptr.vmem [resolvable:$false] %s515_s16 }
  0x60   : > { %v239_v2 = vmul.f32 %v238_v1, %v237_v0  ;;  %v240_v3 = vstv %s377_s6  ;;  %s517_s17 = scalar_lea.vmem %s516_s16, 256  ;;  %p518_p2 = scmp.lt.s32.totalorder %s772_s9, %s516_s16 }
  0x61   : > { %p514_p1 = pneg %p513_p4  ;;  %p519_p7 = scmp.lt.s32.totalorder %s517_s17, %s511_s26 }
  0x62   : > { %v241_v5 = vadd.f32 %v240_v3, %v239_v2 }
  0x63   : > { %p520_p8 = por %p519_p7, %p518_p2 }
  0x64   : > { %v243_v6 = vadd.f32 %v242_v4, %v241_v5 }
  0x65   : > { %p521_p13 = pnand %p520_p8, %p514_p1 }
  0x66   : > { %244 = vst [vmem:[%s234_s4] sm:$0xff] %v243_v6 }
  0x67   : > { %524 = shalt.err (!%p521_p13)
}
  0x68   : > { %s525_s30 = scalar_lea.hbm %s257_s8, 128  ;;  %s529_s10 = scalar_lea.hbm %s815_s3, 256 }
  0x69   : > { %p526_p3 = scmp.ne.s32.totalorder %s257_s8, %s525_s30  ;;  %p530_p10 = scmp.lt.s32.totalorder %s257_s8, %s815_s3 }
  0x6a   : > { %p531_p9 = scmp.lt.s32.totalorder %s529_s10, %s525_s30 }
  0x6b   : > { %p527_p5 = pnand %p526_p3, %p829_p12 }
  0x6c   : > { %p532_p11 = por %p531_p9, %p530_p10 }
  0x6d   : > { %p528_p6 = pneg %p527_p5 }
  0x6f   : > { %p533_p0 = pnand %p532_p11, %p528_p6 }
  0x71   : > { %536 = shalt.err (!%p533_p0)
}
  0x72   : > { %390 = dma.vmem_to_hbm [thread:$0]  (%p829_p12), %s772_s9, 128, %s257_s8, %s246_s27  }
  0x73 PF: > { %s271_s5 = sand.u32 1, %s571_s12   ;;  %p830_p4 = scmp.ne.s32.totalorder %s822_s24, 0 }
  0x74   : > { %p831_p1 = scmp.ge.s32.totalorder %s583_s15, 2  ;;  %s272_s6 = scalar_lea.sflag [#allocation4], %s271_s5 }
  0x76   : > { %p404_p2 = pnand %p831_p1, %p830_p4 }
  0x78   : > { %p405_p7 = pneg %p404_p2 }
  0x7a   : > { %566 = dma.done.wait (%p405_p7), %s272_s6, 128  }
  0x7b   : > { %568 = vsyncadd (%p405_p7), %s272_s6, 4294967168  ;;  %p20_p8 = scmp.ge.s32.totalorder %s634_s18, 4   ;;  %s832_s12 = smov %s575_s13 }
  0x7c   : > { %s833_s13 = smov %s579_s14  ;;  %s834_s14 = smov %s646_s21 }
  0x7d   : > { %s835_s15 = smov %s634_s18  ;;  %22 = sbr.rel (!%p20_p8) target bundleno = 8 (0x8), region = 95 }
  0x82   :  { %277 = vsyncpa [#allocation3], 1 }
  0x83   :  { %279 = vsyncpa [#allocation3 + $0x1], 1 }
  0x84   :  { %280 = vsyncpa [#allocation8], 1 }
  0x85   :  { %282 = vsyncpa [#allocation8 + $0x1], 1 }
  0x86   :  { %283 = vsyncpa [#allocation4], 1 }
  0x87   :  { %285 = vsyncpa [#allocation4 + $0x1], 1 }
  0x88   :  { %286 = vsyncpa [#allocation5], 1 }
  0x89   :  { %288 = vsyncpa [#allocation5 + $0x1], 1 }

</bundles_post_ra>
